<compile_context>
chip_gen: v5e
topology: v5e:2x2
jax: 0.10.0
libtpu: 0.0.40
codegen_flags: <defaults>
</compile_context>

<pallas_src>
import numpy as np
import jax
import jax.numpy as jnp
from jax.experimental import pallas as pl
from jax.experimental.pallas import tpu as pltpu


def _gaussian_kernel1d(kernel_size: int, sigma: float) -> np.ndarray:
    # Matches torchvision.transforms.functional._get_gaussian_kernel1d:
    #   x = linspace(-(k-1)/2, (k-1)/2, k); pdf = exp(-0.5*(x/sigma)^2); k1d = pdf/sum
    half = (kernel_size - 1) * 0.5
    x = np.linspace(-half, half, kernel_size, dtype=np.float64)
    pdf = np.exp(-0.5 * (x / sigma) ** 2)
    return (pdf / pdf.sum()).astype(np.float32)


def _make_blur_kernel(Cb: int, H: int, W: int, kernel_size: int, sigma: float):
    r = kernel_size // 2
    k1d = [float(v) for v in _gaussian_kernel1d(kernel_size, sigma)]  # compile-time consts

    def _separable_pass(xp, out_len: int, axis: int):
        # Static unrolled 1D taps along `axis`, two partial accumulators to
        # break the single add chain (fills more VALU slots per cycle).
        def tap(i):
            if axis == 1:
                return k1d[i] * xp[:, i:i + out_len, :]
            return k1d[i] * xp[:, :, i:i + out_len]

        taps = [tap(i) for i in range(kernel_size)]
        acc0, acc1 = taps[0], None
        for i in range(1, kernel_size):
            if i % 2 == 1:
                acc1 = taps[i] if acc1 is None else acc1 + taps[i]
            else:
                acc0 = acc0 + taps[i]
        return acc0 if acc1 is None else acc0 + acc1

    def blur_kernel(x_ref, o_ref):
        x = x_ref[...].astype(jnp.float32)            # (Cb, H, W)

        # ---- in-kernel reflect padding along H (sublanes), no HBM round trip ----
        if r > 0:
            top = [x[:, k:k + 1, :] for k in range(r, 0, -1)]
            bot = [x[:, H - 1 - k:H - k, :] for k in range(1, r + 1)]
            xp = jnp.concatenate(top + [x] + bot, axis=1)   # (Cb, H+2r, W)
        else:
            xp = x

        # ---- vertical 1D pass (sublane direction) ----
        y = _separable_pass(xp, H, axis=1)            # (Cb, H, W) f32

        # ---- in-kernel reflect padding along W (lanes) ----
        if r > 0:
            left = [y[:, :, k:k + 1] for k in range(r, 0, -1)]
            right = [y[:, :, W - 1 - k:W - k] for k in range(1, r + 1)]
            yp = jnp.concatenate(left + [y] + right, axis=2)  # (Cb, H, W+2r)
        else:
            yp = y

        # ---- horizontal 1D pass (lane direction) ----
        out = _separable_pass(yp, W, axis=2)          # (Cb, H, W) f32

        o_ref[...] = out.astype(o_ref.dtype)

    return blur_kernel


def gaussian_blur_pallas(sample: jax.Array, kernel_size: int, sigma: float) -> jax.Array:
    """Depthwise 2D Gaussian blur (reflect padding); all blur math inside Pallas."""
    Cs, H, W = sample.shape

    # Channel-block tiling: pick the largest divisor of Cs that still leaves a
    # >=2-step "parallel" grid axis (v7x 2-TC sharding) while amortizing the
    # per-grid-step overhead over several channels.
    if Cs >= 2:
        Cb = max(d for d in range(1, Cs + 1) if Cs % d == 0 and d <= (Cs + 1) // 2)
    else:
        Cb = Cs
    grid_c = Cs // Cb

    # TODO(synk): for very large images (H, W >> 128) row-tile the block
    # (tile_H x full W, halo of r rows) to respect v7x's 64 MiB VMEM, and
    # consider the MXU banded-Toeplitz matmul formulation for the two passes.
    kernel_fn = _make_blur_kernel(Cb, H, W, kernel_size, sigma)

    return pl.pallas_call(
        kernel_fn,
        out_shape=jax.ShapeDtypeStruct((Cs, H, W), sample.dtype),
        grid=(grid_c,),
        in_specs=[pl.BlockSpec((Cb, H, W), lambda c: (c, 0, 0))],
        out_specs=pl.BlockSpec((Cb, H, W), lambda c: (c, 0, 0)),
        compiler_params=pltpu.CompilerParams(dimension_semantics=("parallel",)),
    )(sample)


def custom_gaussian_blur_forward(image, kernel_size_range, sigma_range, num_labels=3):
    # TODO(synk): the module's per-call randomness (apply-prob p, random
    # kernel_size / sigma draws) is replaced by deterministic midpoint choices;
    # the blur is always applied.
    lo, hi = kernel_size_range
    sizes = list(range(lo, hi + 1, 2))
    kernel_size = sizes[len(sizes) // 2]
    if kernel_size % 2 == 0:   # torchvision GaussianBlur requires odd sizes
        kernel_size += 1
    sigma = 0.5 * (sigma_range[0] + sigma_range[1])

    sample = image[:-num_labels]    # blurred channels
    targets = image[-num_labels:]   # label channels pass through untouched
    blurred = gaussian_blur_pallas(sample, kernel_size, sigma)
    return jnp.concatenate([blurred, targets], axis=0), kernel_size, sigma


if __name__ == "__main__":
    key = jax.random.PRNGKey(0)
    C, H, W = 7, 16, 16            # 4 data channels + 3 label channels
    num_labels = 3
    image = jax.random.normal(key, (C, H, W), dtype=jnp.float32)

    out, ks, sig = custom_gaussian_blur_forward(
        image, kernel_size_range=[3, 7], sigma_range=[0.5, 1.5],
        num_labels=num_labels)
    out = jax.block_until_ready(out)
    assert out.shape == (C, H, W)

    # Pure-JAX reference (independent formulation: reflect pad + full 2D taps).
    r = ks // 2
    k1d = _gaussian_kernel1d(ks, sig)
    w2d = np.outer(k1d, k1d).astype(np.float32)
    sample = image[:-num_labels]
    padded = jnp.pad(sample, ((0, 0), (r, r), (r, r)), mode="reflect")
    ref = jnp.zeros_like(sample)
    for ki in range(ks):
        for kj in range(ks):
            ref = ref + w2d[ki, kj] * padded[:, ki:ki + H, kj:kj + W]
    ref = jnp.concatenate([ref, image[-num_labels:]], axis=0)

    np.testing.assert_allclose(np.asarray(out), np.asarray(ref),
                               atol=1e-5, rtol=1e-5)
    print("KERNEL_OK")
</pallas_src>

<mosaic_0001>
module attributes {stable_mosaic.version = 11 : i64} {
  func.func @blur_kernel(%arg0: i32, %arg1: memref<2x16x16xf32, #tpu.memory_space<vmem>>, %arg2: memref<2x16x16xf32, #tpu.memory_space<vmem>>) attributes {dimension_semantics = [#tpu.dimension_semantics<parallel>], iteration_bounds = array<i64: 2>, scalar_prefetch = 0 : i64, scratch_operands = 0 : i64, tpu.core_type = #tpu.core_type<tc>, window_params = [{transform_indices = @transform_0, window_bounds = array<i64: 2, 16, 16>}, {transform_indices = @transform_1, window_bounds = array<i64: 2, 16, 16>}]} {
    %c0 = arith.constant 0 : index
    %c0_0 = arith.constant 0 : index
    %c0_1 = arith.constant 0 : index
    %0 = vector.load %arg1[%c0, %c0_0, %c0_1] : memref<2x16x16xf32, #tpu.memory_space<vmem>>, vector<2x16x16xf32>
    %1 = vector.extract_strided_slice %0 {offsets = [0, 2, 0], sizes = [2, 1, 16], strides = [1, 1, 1]} : vector<2x16x16xf32> to vector<2x1x16xf32>
    %2 = vector.extract_strided_slice %0 {offsets = [0, 1, 0], sizes = [2, 1, 16], strides = [1, 1, 1]} : vector<2x16x16xf32> to vector<2x1x16xf32>
    %3 = vector.extract_strided_slice %0 {offsets = [0, 14, 0], sizes = [2, 1, 16], strides = [1, 1, 1]} : vector<2x16x16xf32> to vector<2x1x16xf32>
    %4 = vector.extract_strided_slice %0 {offsets = [0, 13, 0], sizes = [2, 1, 16], strides = [1, 1, 1]} : vector<2x16x16xf32> to vector<2x1x16xf32>
    %5 = tpu.concatenate %1, %2, %0, %3, %4 in 1 : vector<2x1x16xf32>, vector<2x1x16xf32>, vector<2x16x16xf32>, vector<2x1x16xf32>, vector<2x1x16xf32> -> vector<2x20x16xf32>
    %6 = vector.extract_strided_slice %5 {offsets = [0, 0, 0], sizes = [2, 16, 16], strides = [1, 1, 1]} : vector<2x20x16xf32> to vector<2x16x16xf32>
    %cst = arith.constant 0.054488685 : f32
    %7 = vector.broadcast %cst : f32 to vector<2x16x16xf32>
    %8 = arith.mulf %7, %6 : vector<2x16x16xf32>
    %9 = vector.extract_strided_slice %5 {offsets = [0, 1, 0], sizes = [2, 16, 16], strides = [1, 1, 1]} : vector<2x20x16xf32> to vector<2x16x16xf32>
    %cst_2 = arith.constant 0.244201347 : f32
    %10 = vector.broadcast %cst_2 : f32 to vector<2x16x16xf32>
    %11 = arith.mulf %10, %9 : vector<2x16x16xf32>
    %12 = vector.extract_strided_slice %5 {offsets = [0, 2, 0], sizes = [2, 16, 16], strides = [1, 1, 1]} : vector<2x20x16xf32> to vector<2x16x16xf32>
    %cst_3 = arith.constant 0.402619958 : f32
    %13 = vector.broadcast %cst_3 : f32 to vector<2x16x16xf32>
    %14 = arith.mulf %13, %12 : vector<2x16x16xf32>
    %15 = vector.extract_strided_slice %5 {offsets = [0, 3, 0], sizes = [2, 16, 16], strides = [1, 1, 1]} : vector<2x20x16xf32> to vector<2x16x16xf32>
    %cst_4 = arith.constant 0.244201347 : f32
    %16 = vector.broadcast %cst_4 : f32 to vector<2x16x16xf32>
    %17 = arith.mulf %16, %15 : vector<2x16x16xf32>
    %18 = vector.extract_strided_slice %5 {offsets = [0, 4, 0], sizes = [2, 16, 16], strides = [1, 1, 1]} : vector<2x20x16xf32> to vector<2x16x16xf32>
    %cst_5 = arith.constant 0.054488685 : f32
    %19 = vector.broadcast %cst_5 : f32 to vector<2x16x16xf32>
    %20 = arith.mulf %19, %18 : vector<2x16x16xf32>
    %21 = arith.addf %8, %14 : vector<2x16x16xf32>
    %22 = arith.addf %11, %17 : vector<2x16x16xf32>
    %23 = arith.addf %21, %20 : vector<2x16x16xf32>
    %24 = arith.addf %23, %22 : vector<2x16x16xf32>
    %25 = vector.extract_strided_slice %24 {offsets = [0, 0, 2], sizes = [2, 16, 1], strides = [1, 1, 1]} : vector<2x16x16xf32> to vector<2x16x1xf32>
    %26 = vector.extract_strided_slice %24 {offsets = [0, 0, 1], sizes = [2, 16, 1], strides = [1, 1, 1]} : vector<2x16x16xf32> to vector<2x16x1xf32>
    %27 = vector.extract_strided_slice %24 {offsets = [0, 0, 14], sizes = [2, 16, 1], strides = [1, 1, 1]} : vector<2x16x16xf32> to vector<2x16x1xf32>
    %28 = vector.extract_strided_slice %24 {offsets = [0, 0, 13], sizes = [2, 16, 1], strides = [1, 1, 1]} : vector<2x16x16xf32> to vector<2x16x1xf32>
    %29 = tpu.concatenate %25, %26, %24, %27, %28 in 2 : vector<2x16x1xf32>, vector<2x16x1xf32>, vector<2x16x16xf32>, vector<2x16x1xf32>, vector<2x16x1xf32> -> vector<2x16x20xf32>
    %30 = vector.extract_strided_slice %29 {offsets = [0, 0, 0], sizes = [2, 16, 16], strides = [1, 1, 1]} : vector<2x16x20xf32> to vector<2x16x16xf32>
    %cst_6 = arith.constant 0.054488685 : f32
    %31 = vector.broadcast %cst_6 : f32 to vector<2x16x16xf32>
    %32 = arith.mulf %31, %30 : vector<2x16x16xf32>
    %33 = vector.extract_strided_slice %29 {offsets = [0, 0, 1], sizes = [2, 16, 16], strides = [1, 1, 1]} : vector<2x16x20xf32> to vector<2x16x16xf32>
    %cst_7 = arith.constant 0.244201347 : f32
    %34 = vector.broadcast %cst_7 : f32 to vector<2x16x16xf32>
    %35 = arith.mulf %34, %33 : vector<2x16x16xf32>
    %36 = vector.extract_strided_slice %29 {offsets = [0, 0, 2], sizes = [2, 16, 16], strides = [1, 1, 1]} : vector<2x16x20xf32> to vector<2x16x16xf32>
    %cst_8 = arith.constant 0.402619958 : f32
    %37 = vector.broadcast %cst_8 : f32 to vector<2x16x16xf32>
    %38 = arith.mulf %37, %36 : vector<2x16x16xf32>
    %39 = vector.extract_strided_slice %29 {offsets = [0, 0, 3], sizes = [2, 16, 16], strides = [1, 1, 1]} : vector<2x16x20xf32> to vector<2x16x16xf32>
    %cst_9 = arith.constant 0.244201347 : f32
    %40 = vector.broadcast %cst_9 : f32 to vector<2x16x16xf32>
    %41 = arith.mulf %40, %39 : vector<2x16x16xf32>
    %42 = vector.extract_strided_slice %29 {offsets = [0, 0, 4], sizes = [2, 16, 16], strides = [1, 1, 1]} : vector<2x16x20xf32> to vector<2x16x16xf32>
    %cst_10 = arith.constant 0.054488685 : f32
    %43 = vector.broadcast %cst_10 : f32 to vector<2x16x16xf32>
    %44 = arith.mulf %43, %42 : vector<2x16x16xf32>
    %45 = arith.addf %32, %38 : vector<2x16x16xf32>
    %46 = arith.addf %35, %41 : vector<2x16x16xf32>
    %47 = arith.addf %45, %44 : vector<2x16x16xf32>
    %48 = arith.addf %47, %46 : vector<2x16x16xf32>
    %c0_11 = arith.constant 0 : index
    %c0_12 = arith.constant 0 : index
    %c0_13 = arith.constant 0 : index
    %49 = vector.load %arg2[%c0_11, %c0_12, %c0_13] : memref<2x16x16xf32, #tpu.memory_space<vmem>>, vector<2x16x16xf32>
    tpu.vector_store %arg2[%c0_11, %c0_12, %c0_13], %48 {strides = array<i32>} : memref<2x16x16xf32, #tpu.memory_space<vmem>>, vector<2x16x16xf32>,
    return
  }
  func.func @transform_0(%arg0: i32) -> (i32, i32, i32) {
    %c0_i32 = arith.constant 0 : i32
    %c0_i32_0 = arith.constant 0 : i32
    %c0_i32_1 = arith.constant 0 : i32
    return %arg0, %c0_i32, %c0_i32_0 : i32, i32, i32
  }
  func.func @transform_1(%arg0: i32) -> (i32, i32, i32) {
    %c0_i32 = arith.constant 0 : i32
    %c0_i32_0 = arith.constant 0 : i32
    %c0_i32_1 = arith.constant 0 : i32
    return %arg0, %c0_i32, %c0_i32_0 : i32, i32, i32
  }
}

</mosaic_0001>

<bundles_post_ra>
// kernel: tpu_custom_call.1
= control target key start
LH: loop header
LB: loop body
LE: loop exit
PB: predicated region body
PF: predicated region fallthrough
CT: control target
= control target key end

     0   :  { %6 = vsyncpa [#allocation3], 0  ;;  %s957_s0 = inlined_call_operand.hbm [shape: f32[4,16,16], index: 0, kind: input, shape index: {}]   ;;  %s958_s1 = inlined_call_operand.hbm [shape: f32[4,16,16], index: 1, kind: output, shape index: {}]  }
   0x1   :  { %8 = vsyncpa [#allocation3 + $0x1], 0 }
   0x2   :  { %9 = vsyncpa [#allocation4], 0 }
   0x3   :  { %11 = vsyncpa [#allocation4 + $0x1], 0  ;;  %s757_s6 = smov 0   ;;  %s759_s7 = smov 0  }
   0x4   :  { %s761_s8 = smov 0   ;;  %s763_s9 = smov 0  }
   0x5 LB: > { %s778_s10 = sadd.s32 4294967295, %s735_s9   ;;  %s563_s11 = sadd.s32 4294967294, %s735_s9   ;;  %s735_s9 = sphi %s763_s9, %s968_s9   ;;  %s731_s8 = sphi %s761_s8, %s967_s8   ;;  %s727_s7 = sphi %s759_s7, %s966_s7   ;;  %s723_s6 = sphi %s757_s6, %s965_s6  }
   0x6   : > { %s782_s12 = sadd.s32 1, %s735_s9   ;;  %s24_s13 = sadd.s32 1, %s731_s8 }
   0x7   : > { %s21_s14 = ssub.s32 %s735_s9, %s782_s12  ;;  %p31_p0 = scmp.ne.s32.totalorder %s731_s8, %s727_s7 }
   0x8   : > { %p22_p1 = scmp.eq.s32.totalorder %s21_s14, 0  ;;  %p32_p2 = scmp.eq.s32.totalorder %s735_s9, 0 }
   0x9   : > { %p37_p3 = scmp.ne.s32.totalorder %s727_s7, %s723_s6  ;;  %p38_p4 = scmp.eq.s32.totalorder %s778_s10, 0 }
   0xa   : > { %s794_s15 = scalar_select %p22_p1, %s731_s8, %s24_s13  }
   0xb   : > { %p796_p5 = por %p32_p2, %p31_p0  ;;  %p800_p6 = por %p38_p4, %p37_p3 }
   0xc   : > { %p61_p7 = scmp.eq.s32.totalorder %s778_s10, 1  ;;  %p67_p8 = scmp.eq.s32.totalorder %s563_s11, 1 }
   0xd   : > { %p595_p10 = scmp.lt.s32.totalorder %s735_s9, 2  ;;  %s87_s20 = sand.u32 1, %s731_s8  }
   0xe   : > { %p807_p11 = por %p61_p7, %p31_p0  ;;  %p811_p12 = por %p67_p8, %p37_p3 }
   0xf   : > { %s580_s21 = sshll.u32 %s735_s9, 5  ;;  %s566_s22 = sshll.u32 %s87_s20, 5 }
  0x10   : > { %s97_s25 = scalar_lea.hbm %s957_s0, %s580_s21  ;;  %s91_s27 = scalar_lea.vmem [#allocation2], %s566_s22 }
  0x11   : > { %s98_s26 = sshll.u32 %s97_s25, 4  ;;  %s100_s28 = sshll.u32 %s91_s27, 4  ;;  %s99_s26 = int_to_ptr.hbm [resolvable:$true] %s98_s26  ;;  %s101_s28 = int_to_ptr.vmem [resolvable:$true] %s100_s28 }
  0x12   : > { %p822_p13 = pnand %p595_p10, %p796_p5  ;;  %p570_p0 = scmp.ge.s32.totalorder %s735_s9, 1 }
  0x13   : > { %p108_p1 = scmp.lt.s32.totalorder %s735_s9, 3  ;;  %s88_s30 = scalar_lea.sflag [#allocation3], %s87_s20 }
  0x14   : > { %s639_s2 = sshra.s32 %s99_s26, 4  ;;  %p643_p3 = pneg %p822_p13  ;;  %s640_s2 = int_to_ptr.hbm [resolvable:$true] %s639_s2 }
  0x15   : > { %s641_s3 = scalar_lea.hbm %s640_s2, 32  ;;  %s646_s11 = scalar_lea.hbm %s957_s0, 64 }
  0x16   : > { %p642_p2 = scmp.ne.s32.totalorder %s640_s2, %s641_s3  ;;  %p647_p5 = scmp.lt.s32.totalorder %s640_s2, %s957_s0 }
  0x17   : > { %p648_p8 = scmp.lt.s32.totalorder %s646_s11, %s641_s3 }
  0x18   : > { %p644_p4 = pnand %p643_p3, %p642_p2 }
  0x19   : > { %p649_p10 = por %p648_p8, %p647_p5 }
  0x1a   : > { %p645_p7 = pneg %p644_p4 }
  0x1c   : > { %p650_p9 = pnand %p649_p10, %p645_p7 }
  0x1e   : > { %653 = shalt.err (!%p650_p9)
}
  0x1f   : > { %s737_s16 = smov 128   ;;  %s738_s20 = smov 8  }
  0x20   : > { %590 = dma.hbm_to_vmem [thread:$0]  (!%p822_p13), %s99_s26, 512, %s101_s28, %s88_s30, %s737_s16, %s737_s16, %s738_s20  }
  0x21   : > { %p109_p2 = pnand %p570_p0, %p108_p1 }
  0x22   : > { %s843_s21 = sand.u32 (!%p109_p2), 1, %s727_s7  }
  0x23   : > { %112 = sbr.rel (%p109_p2) target bundleno = 462 (0x1ce), region = 24  ;;  %s571_s22 = sshll.u32 (!%p109_p2), %s843_s21, 5 }
  0x24   : > { %s115_s23 = scalar_lea.sflag (!%p109_p2), [#allocation3], %s843_s21  ;;  %s118_s24 = scalar_lea.vmem (!%p109_p2), [#allocation2], %s571_s22 }
  0x28   : > { %714 = dma.done.wait (%p800_p6), %s115_s23, 512  }
  0x29   : > { %716 = vsyncadd (%p800_p6), %s115_s23, 4294966784  ;;  %vm152_vm0 = vcmask 1041408   ;;  %vm173_vm1 = vcmask 1040384   ;;  %v142_v0 = vld [vmem:[%s118_s24 + $0x10] sm:$0xff]  ;;  %v143_v1 = vld [vmem:[%s118_s24 + $0x18] sm:$0xff]  ;;  %vm180_vm2 = vcmask 1042432  }
  0x2a   : > { %vm207_vm3 = vcmask 1045504   ;;  %vm260_vm4 = vcmask 1043456   ;;  %v140_v2 = vld [vmem:[%s118_s24] sm:$0xff]  ;;  %v147_v3 = vrot.slane %v142_v0, 2  ;;  %v156_v4 = vrot.slane %v142_v0, 6  ;;  %v141_v7 = vld [vmem:[%s118_s24 + $0x8] sm:$0xff] }
  0x2b   : > { %v157_v5 = vrot.slane %v143_v1, 6  ;;  %v166_v6 = vrot.slane %v143_v1, 4  ;;  %v170_v8 = vrot.slane %v143_v1, 2  ;;  %v146_v9 = vrot.slane %v140_v2, 2  ;;  %s739_s17 = smov 126   ;;  %s740_s25 = smov 2  }
  0x2c   : > { %v153_v10 = vrot.slane %v140_v2, 6  ;;  %v154_v11 = vrot.slane %v141_v7, 6  ;;  %v175_v13 = vsel %vm173_vm1, %v147_v3, %v142_v0  ;;  %vm285_vm5 = vcmask 1046528   ;;  %s741_s26 = smov 4   ;;  %s742_s27 = smov 6  }
  0x2d   : > { %v158_v12 = vsel %vm152_vm0, %v156_v4, %v157_v5  ;;  %v179_v14 = vsel %vm152_vm0, %v157_v5, %v166_v6  ;;  %v165_v15 = vrot.slane %v141_v7, 4  ;;  %v177_v16 = vsel %vm152_vm0, %v175_v13, %v156_v4  ;;  %s743_s28 = smov 124   ;;  %s744_s29 = smov 127  }
  0x2e   : > { %v182_v17 = vsel %vm180_vm2, %v179_v14, %v170_v8  ;;  %v858_v18 = vmul.f32 0.054488685, %v158_v12  ;;  %v191_v19 = vmul.f32 0.24420135, %v158_v12  ;;  %v185_v20 = vmul.f32 0.054488685, %v177_v16 }
  0x2f   : > { %v190_v21 = vmul.f32 0.24420135, %v177_v16  ;;  %v192_v22 = vmul.f32 0.24420135, %v182_v17  ;;  %v155_v23 = vsel %vm152_vm0, %v153_v10, %v154_v11  ;;  %v196_v24 = vmul.f32 0.40261996, %v177_v16 }
  0x30   : > { %v197_v25 = vmul.f32 0.40261996, %v158_v12  ;;  %v238_v26 = vrot.slane %v191_v19, 2  ;;  %v267_v27 = vrot.slane %v858_v18, 4  ;;  %v266_v30 = vrot.slane %v185_v20, 4  ;;  %s137_s30 = scalar_lea.vmem [#allocation5], %s571_s22 }
  0x31   : > { %v237_v28 = vrot.slane %v190_v21, 2  ;;  %v240_v29 = vrot.slane %v192_v22, 2  ;;  %v169_v31 = vrot.slane %v141_v7, 2  ;;  %v213_v32 = vrot.slane %v196_v24, 2  ;;  %s582_s2 = sshll.u32 %s778_s10, 5  ;;  %s487_s11 = sshll.u32 %s137_s30, 4  ;;  %s488_s11 = int_to_ptr.vmem [resolvable:$true] %s487_s11 }
  0x32   : > { %v214_v33 = vrot.slane %v197_v25, 2  ;;  %v174_v34 = vsel %vm173_vm1, %v146_v9, %v140_v2  ;;  %v178_v35 = vsel %vm152_vm0, %v154_v11, %v165_v15  ;;  %v268_v38 = vsel %vm260_vm4, %v266_v30, %v267_v27  ;;  %s486_s5 = scalar_lea.hbm %s958_s1, %s582_s2  ;;  %s474_s10 = scalar_lea.sflag [#allocation4], %s843_s21 }
  0x33   : > { %v239_v36 = vsel %vm207_vm3, %v237_v28, %v238_v26  ;;  %v241_v37 = vsel %vm207_vm3, %v238_v26, %v240_v29  ;;  %v176_v39 = vsel %vm152_vm0, %v174_v34, %v153_v10  ;;  %v181_v43 = vsel %vm180_vm2, %v178_v35, %v169_v31  ;;  %s489_s13 = sshll.u32 %s486_s5, 4  ;;  %s689_s23 = scalar_lea.hbm %s958_s1, 64  ;;  %s490_s13 = int_to_ptr.hbm [resolvable:$true] %s489_s13 }
  0x34   : > { %v215_v40 = vsel %vm207_vm3, %v213_v32, %v214_v33  ;;  %v251_v41 = vadd.f32 %v239_v36, %v190_v21  ;;  %v252_v42 = vadd.f32 %v241_v37, %v191_v19  ;;  %v183_v45 = vmul.f32 0.054488685, %v176_v39  ;;  %s683_s14 = sshra.s32 %s490_s13, 4  ;;  %s684_s14 = int_to_ptr.hbm [resolvable:$true] %s683_s14 }
  0x35   : > { %v224_v44 = vadd.f32 %v215_v40, %v185_v20  ;;  %v184_v46 = vmul.f32 0.054488685, %v155_v23  ;;  %v187_v47 = vmul.f32 0.24420135, %v176_v39  ;;  %v188_v50 = vmul.f32 0.24420135, %v155_v23  ;;  %p690_p0 = scmp.lt.s32.totalorder %s684_s14, %s958_s1 }
  0x36   : > { %v291_v48 = vrot.slane %v251_v41, 1  ;;  %v292_v49 = vrot.slane %v252_v42, 1  ;;  %v189_v51 = vmul.f32 0.24420135, %v181_v43  ;;  %v193_v53 = vmul.f32 0.40261996, %v176_v39 }
  0x37   : > { %v277_v52 = vadd.f32 %v268_v38, %v224_v44  ;;  %v194_v54 = vmul.f32 0.40261996, %v155_v23  ;;  %v232_v55 = vrot.slane %v187_v47, 2  ;;  %v233_v57 = vrot.slane %v188_v50, 2  ;;  %s685_s16 = scalar_lea.hbm %s684_s14, 32 }
  0x38   : > { %v293_v56 = vsel %vm285_vm5, %v291_v48, %v292_v49  ;;  %v235_v58 = vrot.slane %v189_v51, 2  ;;  %v261_v59 = vrot.slane %v183_v45, 4  ;;  %v208_v61 = vrot.slane %v193_v53, 2  ;;  %p686_p6 = scmp.ne.s32.totalorder %s684_s14, %s685_s16  ;;  %p691_p1 = scmp.lt.s32.totalorder %s689_s23, %s685_s16 }
  0x39   : > { %v871_v60 = vadd.f32 %v293_v56, %v277_v52  ;;  %v209_v62 = vrot.slane %v194_v54, 2  ;;  %v262_v63 = vrot.slane %v184_v46, 4  ;;  %v234_v0 = vsel %vm207_vm3, %v232_v55, %v233_v57 }
  0x3a   : > { %v236_v1 = vsel %vm207_vm3, %v233_v57, %v235_v58  ;;  %v198_v2 = vmul.f32 0.40261996, %v182_v17  ;;  %v200_v3 = vmul.f32 0.054488685, %v182_v17  ;;  %v248_v5 = vadd.f32 %v234_v0, %v187_v47  ;;  %p687_p9 = pnand %p686_p6, %p807_p11  ;;  %p692_p3 = por %p691_p1, %p690_p0 }
  0x3b   : > { %312 = vrot.lane.b32.xlu1 %v871_v60, %s739_s17  ;;  %v210_v4 = vsel %vm207_vm3, %v208_v61, %v209_v62  ;;  %v249_v6 = vadd.f32 %v236_v1, %v188_v50  ;;  %v263_v7 = vsel %vm260_vm4, %v261_v59, %v262_v63  ;;  %v253_v10 = vadd.f32 %v240_v29, %v192_v22 }
  0x3c   : > { %v222_v8 = vadd.f32 %v210_v4, %v183_v45  ;;  %v216_v9 = vrot.slane %v198_v2, 2  ;;  %v269_v11 = vrot.slane %v200_v3, 4  ;;  %v286_v12 = vrot.slane %v248_v5, 1  ;;  %p688_p13 = pneg %p687_p9 }
  0x3d   : > { %v287_v13 = vrot.slane %v249_v6, 1  ;;  %v195_v14 = vmul.f32 0.40261996, %v181_v43  ;;  %v199_v15 = vmul.f32 0.054488685, %v181_v43  ;;  %v294_v20 = vrot.slane %v253_v10, 1 }
  0x3e   : > { %v275_v16 = vadd.f32 %v263_v7, %v222_v8  ;;  %v217_v17 = vsel %vm207_vm3, %v214_v33, %v216_v9  ;;  %v270_v19 = vsel %vm260_vm4, %v267_v27, %v269_v11  ;;  %v250_v25 = vadd.f32 %v235_v58, %v189_v51  ;;  %p693_p4 = pnand %p692_p3, %p688_p13 }
  0x3f   : > { %v288_v21 = vsel %vm285_vm5, %v286_v12, %v287_v13  ;;  %v225_v23 = vadd.f32 %v217_v17, %v858_v18  ;;  %v211_v24 = vrot.slane %v195_v14, 2  ;;  %v295_v22 = vsel %vm285_vm5, %v292_v49, %v294_v20 }
  0x40   : > { %v300_v26 = vadd.f32 %v288_v21, %v275_v16  ;;  %v264_v28 = vrot.slane %v199_v15, 4  ;;  %v289_v31 = vrot.slane %v250_v25, 1  ;;  %vm356_vm6 = vcmask 7168  }
  0x41   : > { %v278_v29 = vadd.f32 %v270_v19, %v225_v23  ;;  %v212_v30 = vsel %vm207_vm3, %v209_v62, %v211_v24  ;;  %vm361_vm7 = vcmask 15360   ;;  %vm371_vm8 = vcmask 154624  }
  0x42   : > { %308 = vrot.lane.b32.xlu0 %v300_v26, %s739_s17  ;;  %v223_v32 = vadd.f32 %v212_v30, %v184_v46  ;;  %v265_v27 = vsel %vm260_vm4, %v262_v63, %v264_v28  ;;  %320 = vrot.lane.b32.xlu2 %v300_v26, %s740_s25  ;;  %v290_v18 = vsel %vm285_vm5, %v287_v13, %v289_v31  ;;  %vm366_vm9 = vcmask 146432  }
  0x43   : > { %v303_v33 = vadd.f32 %v295_v22, %v278_v29  ;;  %vm468_vm10 = vcmask 130048  }
  0x44   : > { %v276_v34 = vadd.f32 %v265_v27, %v223_v32 }
  0x45   : > { %314 = vrot.lane.b32.xlu1 %v303_v33, %s739_s17 }
  0x46   : > { %v301_v35 = vadd.f32 %v290_v18, %v276_v34 }
  0x4a   : > { %310 = vrot.lane.b32.xlu0 %v301_v35, %s739_s17  ;;  %322 = vrot.lane.b32.xlu2 %v301_v35, %s740_s25 }
  0x4d   : > { %326 = vrot.lane.b32.xlu1 %v303_v33, %s740_s25 }
  0x52   : > { %324 = vrot.lane.b32.xlu0 %v871_v60, %s740_s25  ;;  %332 = vrot.lane.b32.xlu2 %v300_v26, %s741_s26 }
  0x55   : > { %336 = vrot.lane.b32.xlu1 %v871_v60, %s741_s26 }
  0x5a   : > { %334 = vrot.lane.b32.xlu0 %v301_v35, %s741_s26  ;;  %338 = vrot.lane.b32.xlu2 %v303_v33, %s741_s26 }
  0x5d   : > { %346 = vrot.lane.b32.xlu1 %v301_v35, %s742_s27 }
  0x62   : > { %344 = vrot.lane.b32.xlu0 %v300_v26, %s742_s27  ;;  %348 = vrot.lane.b32.xlu2 %v871_v60, %s742_s27 }
  0x6a   : > { %350 = vrot.lane.b32.xlu0 %v303_v33, %s742_s27 }
  0x9c   : > { %v321_v36 = vpop.permute.xlu2 %320 }
  0xa4   : > { %v323_v37 = vpop.permute.xlu2 %322 }
  0xac   : > { %v333_v40 = vpop.permute.xlu2 %332 }
  0xad   : > { %v313_v38 = vpop.permute.xlu1 %312 }
  0xae   : > { %v359_v45 = vsel %vm356_vm6, %v313_v38, %v871_v60 }
  0xb4   : > { %v309_v39 = vpop.permute.xlu0 %308  ;;  %v339_v43 = vpop.permute.xlu2 %338 }
  0xb5   : > { %v357_v55 = vsel %vm356_vm6, %v309_v39, %v300_v26 }
  0xb6   : > { %v362_v60 = vsel %vm361_vm7, %v357_v55, %v321_v36 }
  0xb7   : > { %v315_v41 = vpop.permute.xlu1 %314  ;;  %v367_v63 = vsel %vm366_vm9, %v362_v60, %v333_v40 }
  0xb8   : > { %v360_v2 = vsel %vm356_vm6, %v315_v41, %v303_v33 }
  0xbc   : > { %v311_v42 = vpop.permute.xlu0 %310  ;;  %v349_v47 = vpop.permute.xlu2 %348 }
  0xbd   : > { %v358_v53 = vsel %vm356_vm6, %v311_v42, %v301_v35 }
  0xbe   : > { %v363_v56 = vsel %vm361_vm7, %v358_v53, %v323_v37 }
  0xbf   : > { %v327_v44 = vpop.permute.xlu1 %326 }
  0xc0   : > { %v365_v4 = vsel %vm361_vm7, %v360_v2, %v327_v44 }
  0xc1   : > { %v370_v7 = vsel %vm366_vm9, %v365_v4, %v339_v43 }
  0xc4   : > { %v325_v46 = vpop.permute.xlu0 %324 }
  0xc5   : > { %v364_v48 = vsel %vm361_vm7, %v359_v45, %v325_v46 }
  0xc7   : > { %v337_v49 = vpop.permute.xlu1 %336 }
  0xc8   : > { %v369_v50 = vsel %vm366_vm9, %v364_v48, %v337_v49 }
  0xc9   : > { %v374_v51 = vsel %vm371_vm8, %v369_v50, %v349_v47 }
  0xca   : > { %v382_v52 = vmul.f32 0.24420135, %v374_v51  ;;  %v386_v13 = vmul.f32 0.40261996, %v374_v51  ;;  %v378_v14 = vmul.f32 0.054488685, %v374_v51 }
  0xcc   : > { %v335_v54 = vpop.permute.xlu0 %334  ;;  %416 = vrot.lane.b32.xlu0 %v382_v52, %s739_s17 }
  0xcd   : > { %v368_v57 = vsel %vm366_vm9, %v363_v56, %v335_v54 }
  0xcf   : > { %v347_v58 = vpop.permute.xlu1 %346 }
  0xd0   : > { %v373_v59 = vsel %vm371_vm8, %v368_v57, %v347_v58 }
  0xd1   : > { %v381_v61 = vmul.f32 0.24420135, %v373_v59  ;;  %v385_v62 = vmul.f32 0.40261996, %v373_v59  ;;  %v377_v15 = vmul.f32 0.054488685, %v373_v59 }
  0xd3   : > { %414 = vrot.lane.b32.xlu2 %v381_v61, %s739_s17 }
  0xd4   : > { %v345_v0 = vpop.permute.xlu0 %344  ;;  %394 = vrot.lane.b32.xlu0 %v385_v62, %s739_s17 }
  0xd5   : > { %v372_v1 = vsel %vm371_vm8, %v367_v63, %v345_v0 }
  0xd6   : > { %v380_v3 = vmul.f32 0.24420135, %v372_v1  ;;  %v384_v5 = vmul.f32 0.40261996, %v372_v1  ;;  %v376_v6 = vmul.f32 0.054488685, %v372_v1 }
  0xd8   : > { %412 = vrot.lane.b32.xlu1 %v380_v3, %s739_s17 }
  0xdb   : > { %392 = vrot.lane.b32.xlu2 %v384_v5, %s739_s17 }
  0xdc   : > { %v351_v8 = vpop.permute.xlu0 %350  ;;  %432 = vrot.lane.b32.xlu0 %v376_v6, %s743_s28 }
  0xdd   : > { %v375_v9 = vsel %vm371_vm8, %v370_v7, %v351_v8 }
  0xde   : > { %v383_v10 = vmul.f32 0.24420135, %v375_v9  ;;  %v387_v11 = vmul.f32 0.40261996, %v375_v9  ;;  %v379_v12 = vmul.f32 0.054488685, %v375_v9 }
  0xe0   : > { %418 = vrot.lane.b32.xlu1 %v383_v10, %s739_s17 }
  0xe3   : > { %398 = vrot.lane.b32.xlu2 %v387_v11, %s739_s17 }
  0xe4   : > { %438 = vrot.lane.b32.xlu0 %v379_v12, %s743_s28 }
  0xe8   : > { %396 = vrot.lane.b32.xlu1 %v386_v13, %s739_s17 }
  0xeb   : > { %436 = vrot.lane.b32.xlu2 %v378_v14, %s743_s28 }
  0xf0   : > { %434 = vrot.lane.b32.xlu1 %v377_v15, %s743_s28 }
 0x12d   : > { %v415_v16 = vpop.permute.xlu2 %414 }
 0x12e   : > { %v425_v17 = vadd.f32 %v415_v16, %v381_v61 }
 0x130   : > { %454 = vrot.lane.b32.xlu2 %v425_v17, %s744_s29 }
 0x135   : > { %v393_v26 = vpop.permute.xlu2 %392 }
 0x136   : > { %v404_v40 = vadd.f32 %v393_v26, %v376_v6 }
 0x13d   : > { %v399_v22 = vpop.permute.xlu2 %398 }
 0x13e   : > { %v417_v19 = vpop.permute.xlu0 %416  ;;  %v407_v44 = vadd.f32 %v399_v22, %v379_v12 }
 0x13f   : > { %v426_v20 = vadd.f32 %v417_v19, %v382_v52 }
 0x141   : > { %456 = vrot.lane.b32.xlu0 %v426_v20, %s744_s29 }
 0x145   : > { %v437_v29 = vpop.permute.xlu2 %436 }
 0x146   : > { %v395_v30 = vpop.permute.xlu0 %394 }
 0x147   : > { %v405_v32 = vadd.f32 %v395_v30, %v377_v15 }
 0x14a   : > { %v413_v21 = vpop.permute.xlu1 %412 }
 0x14b   : > { %v424_v23 = vadd.f32 %v413_v21, %v380_v3 }
 0x14d   : > { %452 = vrot.lane.b32.xlu1 %v424_v23, %s744_s29 }
 0x14e   : > { %v433_v34 = vpop.permute.xlu0 %432 }
 0x14f   : > { %v444_v41 = vadd.f32 %v433_v34, %v404_v40 }
 0x152   : > { %v419_v24 = vpop.permute.xlu1 %418 }
 0x153   : > { %v427_v25 = vadd.f32 %v419_v24, %v383_v10 }
 0x155   : > { %458 = vrot.lane.b32.xlu1 %v427_v25, %s744_s29 }
 0x156   : > { %v439_v35 = vpop.permute.xlu0 %438 }
 0x157   : > { %v447_v45 = vadd.f32 %v439_v35, %v407_v44 }
 0x15a   : > { %v397_v28 = vpop.permute.xlu1 %396 }
 0x15b   : > { %v406_v36 = vadd.f32 %v397_v28, %v378_v14 }
 0x15d   : > { %v446_v37 = vadd.f32 %v437_v29, %v406_v36 }
 0x162   : > { %v435_v31 = vpop.permute.xlu1 %434 }
 0x163   : > { %v445_v27 = vadd.f32 %v435_v31, %v405_v32 }
 0x18a   : > { %v455_v33 = vpop.permute.xlu2 %454 }
 0x18b   : > { %v465_v18 = vadd.f32 %v455_v33, %v445_v27 }
 0x18d   : > { %470 = vst.msk [vmem:[%s137_s30 + $0x8] sm:$0xff] %vm468_vm10, %v465_v18 }
 0x1b3   : > { %v457_v38 = vpop.permute.xlu0 %456 }
 0x1b4   : > { %v466_v39 = vadd.f32 %v457_v38, %v446_v37 }
 0x1b6   : > { %471 = vst.msk [vmem:[%s137_s30 + $0x10] sm:$0xff] %vm468_vm10, %v466_v39 }
 0x1bf   : > { %v453_v42 = vpop.permute.xlu1 %452 }
 0x1c0   : > { %v464_v43 = vadd.f32 %v453_v42, %v444_v41 }
 0x1c2   : > { %469 = vst.msk [vmem:[%s137_s30] sm:$0xff] %vm468_vm10, %v464_v43 }
 0x1c7   : > { %v459_v46 = vpop.permute.xlu1 %458 }
 0x1c8   : > { %v467_v47 = vadd.f32 %v459_v46, %v447_v45 }
 0x1ca   : > { %472 = vst.msk [vmem:[%s137_s30 + $0x18] sm:$0xff] %vm468_vm10, %v467_v47 }
 0x1cb   : > { %696 = shalt.err (!%p693_p4)
}
 0x1cc   : > { %s745_s21 = smov 128   ;;  %s746_s25 = smov 8  }
 0x1cd   : > { %585 = dma.vmem_to_hbm [thread:$0]  (%p807_p11), %s488_s11, 512, %s490_s13, %s474_s10, %s745_s21, %s745_s21, %s746_s25  }
 0x1ce PF: > { %s504_s26 = sand.u32 1, %s723_s6   ;;  %p964_p7 = scmp.ge.s32.totalorder %s735_s9, 2 }
 0x1cf   : > { %s505_s27 = scalar_lea.sflag [#allocation4], %s504_s26 }
 0x1d0   : > { %p592_p5 = pnand %p964_p7, %p811_p12 }
 0x1d2   : > { %p593_p8 = pneg %p592_p5 }
 0x1d4   : > { %718 = dma.done.wait (%p593_p8), %s505_s27, 512  }
 0x1d5   : > { %720 = vsyncadd (%p593_p8), %s505_s27, 4294966784  ;;  %p14_p10 = scmp.ge.s32.totalorder %s782_s12, 4   ;;  %s965_s6 = smov %s727_s7 }
 0x1d6   : > { %s966_s7 = smov %s731_s8  ;;  %s967_s8 = smov %s794_s15 }
 0x1d7   : > { %s968_s9 = smov %s782_s12  ;;  %16 = sbr.rel (!%p14_p10) target bundleno = 5 (0x5), region = 69 }
 0x1dc   :  { %511 = vsyncpa [#allocation3], 1 }
 0x1dd   :  { %513 = vsyncpa [#allocation3 + $0x1], 1 }
 0x1de   :  { %514 = vsyncpa [#allocation4], 1 }
 0x1df   :  { %516 = vsyncpa [#allocation4 + $0x1], 1 }

</bundles_post_ra>
